<compile_context>
chip_gen: v6e
topology: v6e:2x2x1
jax: 0.10.0
libtpu: 0.0.40
codegen_flags: <defaults>
</compile_context>

<pallas_src>
import jax
import jax.numpy as jnp
from jax.experimental import pallas as pl
from jax.experimental.pallas import tpu as pltpu

_LANE_W = 512        # lane-dense last dim (multiple of 128)
_MAX_TILE_M = 1024   # 1024 x 512 f32 = 2 MiB/buffer; 1-in/1-out double-buffered = 8 MiB VMEM


def _softplus(x):
    # Numerically stable softplus; equal to F.softplus(x, beta=1, threshold=20)
    # to within f32 precision (for x > 20 the correction term is < 1 ulp).
    return jnp.maximum(x, 0.0) + jnp.log1p(jnp.exp(-jnp.abs(x)))


def _softplus_kernel(x_ref, o_ref):
    o_ref[...] = _softplus(x_ref[...])


def _round_up(a, b):
    return (a + b - 1) // b * b


@jax.jit
def csplit_softplus(x):
    """x: complex64 array (e.g. NCHW). Returns softplus(x.real) + 1j*softplus(x.imag)."""
    orig_shape = x.shape
    n_elem = x.size            # complex elements
    total = 2 * n_elem         # float32 elements (real plane + imag plane)

    # Pack both planes into one float32 slab (single DMA stream in/out of the kernel).
    flat = jnp.concatenate([jnp.real(x).reshape(-1), jnp.imag(x).reshape(-1)])

    # Lane-dense 2-D layout, padded so rows divide evenly into tiles.
    rows = pl.cdiv(total, _LANE_W)
    tile_m = min(_MAX_TILE_M, _round_up(rows, 8))
    rows_padded = _round_up(rows, tile_m)
    padded_total = rows_padded * _LANE_W
    if padded_total != total:
        flat = jnp.pad(flat, (0, padded_total - total))
    slab = flat.reshape(rows_padded, _LANE_W)

    grid = (rows_padded // tile_m,)
    spec = pl.BlockSpec((tile_m, _LANE_W), lambda i: (i, 0))

    out_slab = pl.pallas_call(
        _softplus_kernel,
        out_shape=jax.ShapeDtypeStruct((rows_padded, _LANE_W), jnp.float32),
        grid=grid,
        in_specs=[spec],
        out_specs=spec,
        compiler_params=pltpu.CompilerParams(
            dimension_semantics=("parallel",)),
    )(slab)

    out_flat = out_slab.reshape(-1)[:total]
    out_re = out_flat[:n_elem].reshape(orig_shape)
    out_im = out_flat[n_elem:].reshape(orig_shape)
    return jax.lax.complex(out_re, out_im)


if __name__ == "__main__":
    key = jax.random.PRNGKey(0)
    k_re, k_im = jax.random.split(key)
    shape = (2, 4, 16, 16)  # N, C, H, W
    x_re = jax.random.normal(k_re, shape, dtype=jnp.float32) * 5.0
    x_im = jax.random.normal(k_im, shape, dtype=jnp.float32) * 5.0
    x = jax.lax.complex(x_re, x_im)

    out = csplit_softplus(x)
    out = jax.block_until_ready(out)

    # Reference check in plain JAX.
    ref_re = jax.nn.softplus(x_re)
    ref_im = jax.nn.softplus(x_im)
    assert out.shape == shape and out.dtype == jnp.complex64
    assert jnp.allclose(jnp.real(out), ref_re, atol=1e-5, rtol=1e-5)
    assert jnp.allclose(jnp.imag(out), ref_im, atol=1e-5, rtol=1e-5)

    print("KERNEL_OK")
</pallas_src>

<mosaic_0001>
module attributes {stable_mosaic.version = 11 : i64} {
  func.func @_softplus_kernel(%arg0: i32, %arg1: memref<8x512xf32, #tpu.memory_space<vmem>>, %arg2: memref<8x512xf32, #tpu.memory_space<vmem>>) attributes {dimension_semantics = [#tpu.dimension_semantics<parallel>], iteration_bounds = array<i64: 1>, scalar_prefetch = 0 : i64, scratch_operands = 0 : i64, tpu.core_type = #tpu.core_type<tc>, window_params = [{transform_indices = @transform_0, window_bounds = array<i64: 8, 512>}, {transform_indices = @transform_1, window_bounds = array<i64: 8, 512>}]} {
    %c0 = arith.constant 0 : index
    %c0_0 = arith.constant 0 : index
    %0 = vector.load %arg1[%c0, %c0_0] : memref<8x512xf32, #tpu.memory_space<vmem>>, vector<8x512xf32>
    %cst = arith.constant 0.000000e+00 : f32
    %1 = vector.broadcast %cst : f32 to vector<8x512xf32>
    %2 = arith.maximumf %0, %1 : vector<8x512xf32>
    %3 = math.absf %0 : vector<8x512xf32>
    %cst_1 = arith.constant 0.000000e+00 : f32
    %4 = vector.broadcast %cst_1 : f32 to vector<8x512xf32>
    %5 = arith.subf %4, %3 : vector<8x512xf32>
    %6 = math.exp %5 : vector<8x512xf32>
    %7 = math.log1p %6 : vector<8x512xf32>
    %8 = arith.addf %2, %7 : vector<8x512xf32>
    %c0_2 = arith.constant 0 : index
    %c0_3 = arith.constant 0 : index
    %9 = vector.load %arg2[%c0_2, %c0_3] : memref<8x512xf32, #tpu.memory_space<vmem>>, vector<8x512xf32>
    tpu.vector_store %arg2[%c0_2, %c0_3], %8 {strides = array<i32>} : memref<8x512xf32, #tpu.memory_space<vmem>>, vector<8x512xf32>,
    return
  }
  func.func @transform_0(%arg0: i32) -> (i32, i32) {
    %c0_i32 = arith.constant 0 : i32
    %c0_i32_0 = arith.constant 0 : i32
    return %arg0, %c0_i32 : i32, i32
  }
  func.func @transform_1(%arg0: i32) -> (i32, i32) {
    %c0_i32 = arith.constant 0 : i32
    %c0_i32_0 = arith.constant 0 : i32
    return %arg0, %c0_i32 : i32, i32
  }
}

</mosaic_0001>

<bundles_post_ra>
// kernel: custom-call
= control target key start
LH: loop header
LB: loop body
LE: loop exit
PB: predicated region body
PF: predicated region fallthrough
CT: control target
= control target key end

     0   :  { %2 = vsyncpa [#allocation0], 0  ;;  %s47_s0 = inlined_call_operand.hbm [shape: c64[2,4,16,16], index: 0, kind: input, shape index: {}]   ;;  %s48_s1 = inlined_call_operand.vmem [shape: f32[2,4,16,16], index: 1, kind: output, shape index: {}]  }
   0x1   :  { %s3_s8 = sshll.u32 %s48_s1, 4  ;;  %s4_s8 = int_to_ptr.vmem [resolvable:$true] %s3_s8 }
   0x2   :  { %s17_s9 = scalar_lea.vmem %s4_s8, 2048  ;;  %p22_p1 = scmp.lt.s32.totalorder %s4_s8, %s4_s8 }
   0x3   :  { %p18_p0 = scmp.ne.s32.totalorder %s4_s8, %s17_s9  ;;  %p23_p2 = scmp.lt.s32.totalorder %s17_s9, %s17_s9 }
   0x5   :  { %p24_p3 = por %p23_p2, %p22_p1 }
   0x7   :  { %p25_p4 = pnand %p24_p3, %p18_p0 }
   0x9   :  { %28 = shalt.err (!%p25_p4)  }
   0xa   :  { %6 = dma.hbm_to_vmem [thread:$0]  %s47_s0, 2048, %s4_s8, [#allocation0] }
   0xb   :  { %29 = dma.done.wait [#allocation0], 2048  }
   0xc   :  { %30 = vsyncadd [#allocation0], 4294965248 }
   0xd   :  { %8 = vsyncpa [#allocation0], 1 }

// kernel: custom-call.1
= control target key start
LH: loop header
LB: loop body
LE: loop exit
PB: predicated region body
PF: predicated region fallthrough
CT: control target
= control target key end

     0   :  { %s51_s0 = inlined_call_operand.hbm [shape: c64[2,4,16,16], index: 0, kind: input, shape index: {}]   ;;  %s52_s1 = inlined_call_operand.vmem [shape: f32[2,4,16,16], index: 1, kind: output, shape index: {}]  }
   0x1   :  { %s2_s8 = scalar_lea.hbm %s51_s0, 2048 }
   0x2   :  { %3 = vsyncpa [#allocation0], 0  ;;  %s4_s11 = sshll.u32 %s52_s1, 4  ;;  %s5_s11 = int_to_ptr.vmem [resolvable:$true] %s4_s11 }
   0x3   :  { %s20_s12 = scalar_lea.vmem %s5_s11, 2048  ;;  %p25_p1 = scmp.lt.s32.totalorder %s5_s11, %s5_s11 }
   0x4   :  { %p21_p0 = scmp.ne.s32.totalorder %s5_s11, %s20_s12  ;;  %p26_p2 = scmp.lt.s32.totalorder %s20_s12, %s20_s12 }
   0x6   :  { %p27_p3 = por %p26_p2, %p25_p1 }
   0x8   :  { %p28_p4 = pnand %p27_p3, %p21_p0 }
   0xa   :  { %31 = shalt.err (!%p28_p4)  }
   0xb   :  { %7 = dma.hbm_to_vmem [thread:$0]  %s2_s8, 2048, %s5_s11, [#allocation0] }
   0xc   :  { %33 = dma.done.wait [#allocation0], 2048  }
   0xd   :  { %34 = vsyncadd [#allocation0], 4294965248 }
   0xe   :  { %9 = vsyncpa [#allocation0], 1 }

// kernel: custom-call.2
= control target key start
LH: loop header
LB: loop body
LE: loop exit
PB: predicated region body
PF: predicated region fallthrough
CT: control target
= control target key end

     0   :  { %s92_s0 = inlined_call_operand.vmem [shape: f32[2,4,16,16], index: 0, kind: input, shape index: {}]   ;;  %s93_s1 = inlined_call_operand.vmem [shape: f32[2,4,16,16], index: 1, kind: input, shape index: {}]   ;;  %s94_s2 = inlined_call_operand.hbm [shape: c64[2,4,16,16], index: 2, kind: output, shape index: {}]  }
   0x1   :  { %s3_s11 = scalar_lea.hbm %s94_s2, 2048 }
   0x2   :  { %4 = vsyncpa [#allocation0], 0  ;;  %s5_s14 = sshll.u32 %s92_s0, 4  ;;  %s6_s14 = int_to_ptr.vmem [resolvable:$true] %s5_s14 }
   0x3   :  { %s18_s15 = scalar_lea.vmem %s6_s14, 2048  ;;  %p23_p1 = scmp.lt.s32.totalorder %s6_s14, %s6_s14 }
   0x4   :  { %p19_p0 = scmp.ne.s32.totalorder %s6_s14, %s18_s15  ;;  %p24_p2 = scmp.lt.s32.totalorder %s18_s15, %s18_s15 }
   0x6   :  { %p25_p3 = por %p24_p2, %p23_p1 }
   0x8   :  { %p26_p4 = pnand %p25_p3, %p19_p0 }
   0xa   :  { %29 = shalt.err (!%p26_p4)  }
   0xb   :  { %8 = dma.vmem_to_hbm [thread:$0]  %s6_s14, 2048, %s94_s2, [#allocation0] }
   0xc   :  { %61 = dma.done.wait [#allocation0], 2048  }
   0xd   :  { %62 = vsyncadd [#allocation0], 4294965248 }
   0xe   :  { %10 = vsyncpa [#allocation0], 1 }
   0xf   :  { %11 = vsyncpa [#allocation1], 0  ;;  %s12_s0 = sshll.u32 %s93_s1, 4  ;;  %s13_s0 = int_to_ptr.vmem [resolvable:$true] %s12_s0 }
  0x10   :  { %s38_s20 = scalar_lea.vmem %s13_s0, 2048  ;;  %p43_p6 = scmp.lt.s32.totalorder %s13_s0, %s13_s0 }
  0x11   :  { %p39_p5 = scmp.ne.s32.totalorder %s13_s0, %s38_s20  ;;  %p44_p7 = scmp.lt.s32.totalorder %s38_s20, %s38_s20 }
  0x13   :  { %p45_p8 = por %p44_p7, %p43_p6 }
  0x15   :  { %p46_p9 = pnand %p45_p8, %p39_p5 }
  0x17   :  { %49 = shalt.err (!%p46_p9)  }
  0x18   :  { %15 = dma.vmem_to_hbm [thread:$0]  %s13_s0, 2048, %s3_s11, [#allocation1] }
  0x19   :  { %63 = dma.done.wait [#allocation1], 2048  }
  0x1a   :  { %64 = vsyncadd [#allocation1], 4294965248 }
  0x1b   :  { %17 = vsyncpa [#allocation1], 1 }

// kernel: csplit_softplus.1
= control target key start
LH: loop header
LB: loop body
LE: loop exit
PB: predicated region body
PF: predicated region fallthrough
CT: control target
= control target key end

     0   :  { %s152_s0 = inlined_call_operand.vmem [shape: f32[8,512], index: 0, kind: input, shape index: {}]   ;;  %s153_s1 = inlined_call_operand.vmem [shape: f32[8,512], index: 1, kind: output, shape index: {}]  }
   0x1   :  { %v109_v0 = vld [vmem:[%s152_s0] sm:$0xff]  ;;  %v114_v1 = vld [vmem:[%s152_s0 + $0x8] sm:$0xff]  ;;  %v119_v2 = vld [vmem:[%s152_s0 + $0x10] sm:$0xff] }
   0x2   :  { %v16_v3 = vand.u32 2147483647, %v109_v0  ;;  %v17_v4 = vand.u32 2147483647, %v114_v1  ;;  %v18_v5 = vand.u32 2147483647, %v119_v2 }
   0x3   :  { %v127_v6 = vld [vmem:[%s152_s0 + $0x18] sm:$0xff]  ;;  %v12_v37 = vmax.f32 %v109_v0, 0.0  ;;  %v13_v43 = vmax.f32 %v114_v1, 0.0  ;;  %v14_v47 = vmax.f32 %v119_v2, 0.0 }
   0x4   :  { %v20_v7 = vsub.f32 0.0, %v16_v3  ;;  %v21_v8 = vsub.f32 0.0, %v17_v4  ;;  %v19_v9 = vand.u32 2147483647, %v127_v6  ;;  %v22_v10 = vsub.f32 0.0, %v18_v5 }
   0x5   :  { %v15_v54 = vmax.f32 %v127_v6, 0.0 }
   0x6   :  { %v24_v11 = vmul.f32 1.442695, %v20_v7  ;;  %v26_v12 = vmul.f32 1.442695, %v21_v8  ;;  %v23_v13 = vsub.f32 0.0, %v19_v9 }
   0x7   :  { %v28_v14 = vmul.f32 1.442695, %v22_v10 }
   0x8   :  { %80 = vpow2.f32 %v24_v11  ;;  %v30_v15 = vmul.f32 1.442695, %v23_v13 }
   0x9   :  { %82 = vpow2.f32 %v26_v12 }
   0xa   :  { %84 = vpow2.f32 %v28_v14 }
   0xb   :  { %86 = vpow2.f32 %v30_v15 }
  0x15   :  { %v81_v16 = vpop.eup %80 }
  0x16   :  { %v83_v17 = vpop.eup %82  ;;  %v32_v18 = vadd.f32 1.0, %v81_v16  ;;  %v35_v24 = vmul.f32 -0.5, %v81_v16  ;;  %v38_v29 = vand.u32 2147483647, %v81_v16 }
  0x17   :  { %v85_v19 = vpop.eup %84  ;;  %v41_v20 = vadd.f32 1.0, %v83_v17  ;;  %v44_v25 = vmul.f32 -0.5, %v83_v17  ;;  %v47_v31 = vand.u32 2147483647, %v83_v17 }
  0x18   :  { %v87_v21 = vpop.eup %86  ;;  %88 = vlog2.f32 %v32_v18  ;;  %v50_v22 = vadd.f32 1.0, %v85_v19  ;;  %v53_v26 = vmul.f32 -0.5, %v85_v19  ;;  %v36_v27 = vadd.f32 1.0, %v35_v24 }
  0x19   :  { %90 = vlog2.f32 %v41_v20  ;;  %v59_v23 = vadd.f32 1.0, %v87_v21  ;;  %v62_v28 = vmul.f32 -0.5, %v87_v21  ;;  %v45_v30 = vadd.f32 1.0, %v44_v25 }
  0x1a   :  { %92 = vlog2.f32 %v50_v22  ;;  %v54_v32 = vadd.f32 1.0, %v53_v26  ;;  %v56_v33 = vand.u32 2147483647, %v85_v19  ;;  %v37_v34 = vmul.f32 %v81_v16, %v36_v27 }
  0x1b   :  { %94 = vlog2.f32 %v59_v23  ;;  %v63_v35 = vadd.f32 1.0, %v62_v28  ;;  %vm131_vm0 = vcmp.lt.f32.partialorder %v38_v29, 0.0004427343  ;;  %v46_v39 = vmul.f32 %v83_v17, %v45_v30 }
  0x1c   :  { %v65_v40 = vand.u32 2147483647, %v87_v21  ;;  %vm48_vm1 = vcmp.lt.f32.partialorder %v47_v31, 0.0004427343  ;;  %v55_v44 = vmul.f32 %v85_v19, %v54_v32  ;;  %vm57_vm2 = vcmp.lt.f32.partialorder %v56_v33, 0.0004427343 }
  0x1d   :  { %v64_v50 = vmul.f32 %v87_v21, %v63_v35 }
  0x1e   :  { %vm66_vm3 = vcmp.lt.f32.partialorder %v65_v40, 0.0004427343 }
  0x25   :  { %v89_v36 = vpop.eup %88 }
  0x26   :  { %v91_v41 = vpop.eup %90  ;;  %v34_v42 = vmul.f32 0.6931472, %v89_v36 }
  0x27   :  { %v93_v45 = vpop.eup %92  ;;  %v43_v46 = vmul.f32 0.6931472, %v91_v41 }
  0x28   :  { %v40_v48 = vsel %vm131_vm0, %v37_v34, %v34_v42  ;;  %v52_v49 = vmul.f32 0.6931472, %v93_v45  ;;  %v95_v51 = vpop.eup %94 }
  0x29   :  { %v68_v52 = vadd.f32 %v40_v48, %v12_v37  ;;  %v49_v53 = vsel %vm48_vm1, %v46_v39, %v43_v46  ;;  %v61_v57 = vmul.f32 0.6931472, %v95_v51 }
  0x2a   :  { %v69_v55 = vadd.f32 %v49_v53, %v13_v43  ;;  %v58_v56 = vsel %vm57_vm2, %v55_v44, %v52_v49 }
  0x2b   :  { %72 = vst [vmem:[%s153_s1] sm:$0xff] %v68_v52  ;;  %v70_v58 = vadd.f32 %v58_v56, %v14_v47  ;;  %v67_v59 = vsel %vm66_vm3, %v64_v50, %v61_v57 }
  0x2c   :  { %73 = vst [vmem:[%s153_s1 + $0x8] sm:$0xff] %v69_v55  ;;  %v71_v60 = vadd.f32 %v67_v59, %v15_v54 }
  0x2d   :  { %74 = vst [vmem:[%s153_s1 + $0x10] sm:$0xff] %v70_v58 }
  0x2e   :  { %75 = vst [vmem:[%s153_s1 + $0x18] sm:$0xff] %v71_v60 }

</bundles_post_ra>
